<compile_context>
chip_gen: v7x
topology: tpu7x:2x2x1
jax: 0.10.0
libtpu: 0.0.40
codegen_flags: <defaults>
</compile_context>

<pallas_src>
import math
import jax
import jax.numpy as jnp
from jax import lax
from jax.experimental import pallas as pl
from jax.experimental.pallas import tpu as pltpu

MIN_NORM = 1e-5          # hyptorch clamp_min on norms / mobius_add denom
BALL_EPS = 1e-3          # hyptorch project epsilon
TANH_CLAMP = 15.0        # hyptorch tanh input clamp
ARTANH_EPS = 1e-5        # hyptorch artanh domain clamp
LANE = 128


def _tanh(x):
    return jnp.tanh(jnp.clip(x, -TANH_CLAMP, TANH_CLAMP))


# ----------------------------- Pallas kernel --------------------------------

def _make_kernel(c, d_out):
    c = float(c)
    sqrt_c = math.sqrt(c)
    inv_sqrt_c = 1.0 / sqrt_c
    maxnorm = (1.0 - BALL_EPS) * inv_sqrt_c
    maxnorm_sq = maxnorm * maxnorm
    min_sq = MIN_NORM * MIN_NORM

    def row_sum_mxu(t, ones):
        # Sum over the last axis on the MXU (matmuls here have tiny K, so the
        # MXU is nearly idle while the XLU is the binding unit).  The result
        # comes back already broadcast across all 128 lanes, so no
        # [tb,1] -> [tb,128] broadcast is needed when d_out_p == LANE.
        s = jnp.dot(t, ones, preferred_element_type=jnp.float32)   # [tb, LANE]
        return s if t.shape[-1] == LANE else s[:, :1]

    def hyp_linear(x, w_t, ones):
        """HypLinear(bias=False): project(mobius_matvec(W, x, c), c).

        Returns (out, ||out||^2) so mobius_add never recomputes the norms.
        All per-row scalars (tanh/artanh/rsqrt factors AND the projection
        rescale) are folded into a single scale, so `mx` is touched by exactly
        one wide multiply.
        """
        # input norm (d_in is small: plain lane reduction)
        x_sq = jnp.maximum(jnp.sum(x * x, axis=-1, keepdims=True), min_sq)
        inv_x_norm = lax.rsqrt(x_sq)
        x_norm = x_sq * inv_x_norm                               # sqrt(x_sq)

        mx = jnp.dot(x, w_t, preferred_element_type=jnp.float32)  # MXU matmul
        mx_sq_raw = row_sum_mxu(mx * mx, ones)                   # ||mx||^2 (MXU)
        mx_sq = jnp.maximum(mx_sq_raw, min_sq)
        inv_mx_norm = lax.rsqrt(mx_sq)
        mx_norm = mx_sq * inv_mx_norm                             # sqrt(mx_sq)

        # artanh with a single log (halves EUP log traffic)
        a = jnp.clip(sqrt_c * x_norm, -1.0 + ARTANH_EPS, 1.0 - ARTANH_EPS)
        artanh = 0.5 * jnp.log((1.0 + a) / (1.0 - a))

        t = mx_norm * (inv_x_norm * artanh)
        scale = _tanh(t) * (inv_mx_norm * inv_sqrt_c)             # per-row scale
        # NOTE: hyptorch's all-zero-row special case is automatic here:
        # for an all-zero mx row, scale is finite and mx*scale == 0 exactly.

        # closed form:  ||scale * mx||^2 = scale^2 * ||mx||^2
        # -> project() needs no extra reduction.
        res_sq = scale * scale * mx_sq_raw
        res_sq_cl = jnp.maximum(res_sq, min_sq)
        need_proj = res_sq_cl > maxnorm_sq
        proj_scale = maxnorm * lax.rsqrt(res_sq_cl)
        final_scale = jnp.where(need_proj, scale * proj_scale, scale)

        out = mx * final_scale                                    # single wide mul
        out_sq = jnp.where(need_proj, maxnorm_sq, res_sq)         # carried norm^2
        return out, out_sq

    def kernel(x1_ref, x2_ref, w1t_ref, w2t_ref, ones_ref, o_ref):
        ones = ones_ref[...]
        u, u_sq = hyp_linear(x1_ref[...], w1t_ref[...], ones)
        v, v_sq = hyp_linear(x2_ref[...], w2t_ref[...], ones)

        # mobius_add(u, v, c) with carried ||u||^2 / ||v||^2 and <u,v> on MXU.
        uv = row_sum_mxu(u * v, ones)
        two_c_uv = (2.0 * c) * uv
        num = (1.0 + two_c_uv + c * v_sq) * u + (1.0 - c * u_sq) * v
        denom = 1.0 + two_c_uv + (c * c) * (u_sq * v_sq)
        res = num * (1.0 / jnp.maximum(denom, MIN_NORM))          # clamp_min

        if res.shape[-1] != d_out:
            res = res[:, :d_out]          # padded lanes are exactly zero anyway
        o_ref[...] = res.astype(o_ref.dtype)

    return kernel


# ------------------------------ wrappers -------------------------------------

def _round_up(n, m):
    return ((n + m - 1) // m) * m


def prepare_params(w1, w2):
    """One-time (parameter-init-style) layout prep — NOT per forward pass.

    w1:[d_out,d1], w2:[d_out,d2] -> W^T padded to [d_in, d_out_p] (d_out_p a
    multiple of 128) plus a ones[d_out_p, 128] matrix used for MXU row-sums.
    """
    d_out = w1.shape[0]
    assert w2.shape[0] == d_out
    d_out_p = max(_round_up(d_out, LANE), LANE)

    def prep(w):
        wt = jnp.transpose(w).astype(jnp.float32)                 # [d_in, d_out]
        if d_out_p != d_out:
            wt = jnp.pad(wt, ((0, 0), (0, d_out_p - d_out)))
        return wt

    ones_red = jnp.ones((d_out_p, LANE), jnp.float32)
    return prep(w1), prep(w2), ones_red


def _device_kind():
    try:
        return jax.devices()[0].device_kind.lower()
    except Exception:
        return ""


def _has_two_tensorcores(kind):
    return ("v7" in kind) or ("7x" in kind)


def _vmem_capacity_bytes(kind):
    try:
        return int(pltpu.get_tpu_info().vmem_capacity_bytes)
    except Exception:
        pass
    return 64 * 1024 * 1024 if _has_two_tensorcores(kind) else 128 * 1024 * 1024


def _choose_tb(B, two_tc):
    cands = (1024, 512, 256, 128, 64, 32, 16, 8)
    if two_tc:
        # dual-TC chips (v7x): need >=2 grid steps for the "parallel" batch
        # axis to actually be sharded across both TensorCores.
        for cand in cands:
            if B % cand == 0 and B // cand >= 2:
                return cand
    # single-TC chips (v5e/v6e): fewest / biggest steps (per-step ~0.35us).
    for cand in cands:
        if B % cand == 0:
            return cand
    return B   # tiny / odd batch: single full-array block


def concat_poincare_layer(x1, x2, params, c, d_out, *, tb=None):
    """x1:[B,d1], x2:[B,d2], params from prepare_params -> [B,d_out]."""
    w1t_p, w2t_p, ones_red = params
    B, d1 = x1.shape
    B2, d2 = x2.shape
    assert B == B2
    d_out_p = w1t_p.shape[1]
    assert w2t_p.shape[1] == d_out_p and d_out <= d_out_p

    kind = _device_kind()
    if tb is None:
        tb = _choose_tb(B, _has_two_tensorcores(kind))
    assert B % tb == 0

    # VMEM budget: double-buffered activation/output tiles + resident
    # weights/ones + headroom for f32 intermediates.  Cap at 80% of the
    # generation's physical VMEM (64 MiB on v7x, 128 MiB on v5e/v6e) so the
    # compiler keeps scratch headroom.
    est = 4 * (2 * tb * (d1 + d2 + d_out)
               + 2 * (d1 + d2 + LANE) * d_out_p
               + 8 * tb * d_out_p)
    cap = int(0.8 * _vmem_capacity_bytes(kind))
    vmem_limit = int(min(cap, max(32 * 1024 * 1024, 2 * est)))

    def resident_spec(shape, nbytes):
        # Grid-invariant blocks; single-buffer them only when big enough for
        # the halved VMEM footprint to matter (not exercised at small dims).
        if nbytes > 4 * 1024 * 1024:
            return pl.BlockSpec(shape, lambda i: (0, 0),
                                pipeline_mode=pl.Buffered(1))
        return pl.BlockSpec(shape, lambda i: (0, 0))

    out = pl.pallas_call(
        _make_kernel(float(c), d_out),
        out_shape=jax.ShapeDtypeStruct((B, d_out), jnp.float32),
        grid_spec=pltpu.PrefetchScalarGridSpec(
            num_scalar_prefetch=0,
            grid=(B // tb,),
            in_specs=[
                pl.BlockSpec((tb, d1), lambda i: (i, 0)),
                pl.BlockSpec((tb, d2), lambda i: (i, 0)),
                resident_spec((d1, d_out_p), 4 * d1 * d_out_p),
                resident_spec((d2, d_out_p), 4 * d2 * d_out_p),
                resident_spec((d_out_p, LANE), 4 * d_out_p * LANE),
            ],
            out_specs=pl.BlockSpec((tb, d_out), lambda i: (i, 0)),
        ),
        compiler_params=pltpu.CompilerParams(
            dimension_semantics=("parallel",),
            vmem_limit_bytes=vmem_limit),
    )(x1, x2, w1t_p, w2t_p, ones_red)
    return out


# --------------------- pure-JAX reference (faithful hyptorch) ----------------

def _ref_artanh(x):
    x = jnp.clip(x, -1.0 + ARTANH_EPS, 1.0 - ARTANH_EPS)
    return 0.5 * (jnp.log(1.0 + x) - jnp.log(1.0 - x))


def _ref_project(x, c):
    norm = jnp.maximum(jnp.linalg.norm(x, axis=-1, keepdims=True), MIN_NORM)
    maxnorm = (1.0 - BALL_EPS) / math.sqrt(c)
    return jnp.where(norm > maxnorm, x / norm * maxnorm, x)


def _ref_mobius_matvec(m, x, c):
    sqrt_c = math.sqrt(c)
    x_norm = jnp.maximum(jnp.linalg.norm(x, axis=-1, keepdims=True), MIN_NORM)
    mx = x @ m.T
    mx_norm = jnp.maximum(jnp.linalg.norm(mx, axis=-1, keepdims=True), MIN_NORM)
    res_c = (_tanh(mx_norm / x_norm * _ref_artanh(sqrt_c * x_norm))
             * mx / (mx_norm * sqrt_c))
    cond = jnp.all(mx == 0.0, axis=-1, keepdims=True)
    return jnp.where(cond, jnp.zeros((), res_c.dtype), res_c)


def _ref_mobius_add(x, y, c):
    x2 = jnp.sum(x * x, axis=-1, keepdims=True)
    y2 = jnp.sum(y * y, axis=-1, keepdims=True)
    xy = jnp.sum(x * y, axis=-1, keepdims=True)
    num = (1.0 + 2.0 * c * xy + c * y2) * x + (1.0 - c * x2) * y
    denom = 1.0 + 2.0 * c * xy + (c * c) * x2 * y2
    return num / jnp.maximum(denom, MIN_NORM)


def reference(x1, x2, w1, w2, c):
    u = _ref_project(_ref_mobius_matvec(w1, x1, c), c)
    v = _ref_project(_ref_mobius_matvec(w2, x2, c), c)
    return _ref_mobius_add(u, v, c)


# ------------------------------------ main -----------------------------------

if __name__ == "__main__":
    # ConcatPoincareLayer(d1=32, d2=16, d_out=32, c=1.0)
    d1, d2, d_out = 32, 16, 32
    c = 1.0
    B = 16

    key = jax.random.PRNGKey(0)
    k_x1, k_x2, k_w1, k_w2 = jax.random.split(key, 4)

    # kaiming_uniform_(a=sqrt(5)) on weight [out, in] == U(-1/sqrt(fan_in), +)
    b1 = 1.0 / math.sqrt(d1)
    b2 = 1.0 / math.sqrt(d2)
    w1 = jax.random.uniform(k_w1, (d_out, d1), jnp.float32, -b1, b1)
    w2 = jax.random.uniform(k_w2, (d_out, d2), jnp.float32, -b2, b2)

    # Inputs: points inside the Poincare ball (norm < 1/sqrt(c)).
    x1 = jax.random.normal(k_x1, (B, d1), jnp.float32) * 0.05
    x2 = jax.random.normal(k_x2, (B, d2), jnp.float32) * 0.05

    # One-time parameter layout prep (transpose + lane-pad + ones) — not per-call.
    params = tuple(jax.block_until_ready(p) for p in prepare_params(w1, w2))

    out = concat_poincare_layer(x1, x2, params, c, d_out)
    out = jax.block_until_ready(out)

    ref = reference(x1, x2, w1, w2, c)
    assert out.shape == (B, d_out)
    max_err = float(jnp.max(jnp.abs(out - ref)))
    assert jnp.allclose(out, ref, atol=1e-5, rtol=1e-5), max_err

    print("KERNEL_OK")
</pallas_src>

<mosaic_0001>
module attributes {stable_mosaic.version = 11 : i64} {
  func.func @kernel(%arg0: i32, %arg1: memref<16x32xf32, #tpu.memory_space<vmem>>, %arg2: memref<16x16xf32, #tpu.memory_space<vmem>>, %arg3: memref<32x128xf32, #tpu.memory_space<vmem>>, %arg4: memref<16x128xf32, #tpu.memory_space<vmem>>, %arg5: memref<128x128xf32, #tpu.memory_space<vmem>>, %arg6: memref<16x32xf32, #tpu.memory_space<vmem>>) attributes {dimension_semantics = [#tpu.dimension_semantics<parallel>], iteration_bounds = array<i64: 1>, scalar_prefetch = 0 : i64, scratch_operands = 0 : i64, tpu.core_type = #tpu.core_type<tc>, window_params = [{transform_indices = @transform_0, window_bounds = array<i64: 16, 32>}, {transform_indices = @transform_1, window_bounds = array<i64: 16, 16>}, {pipeline_mode = #tpu.pipeline_mode<synchronous>, transform_indices = @transform_2, window_bounds = array<i64: 32, 128>}, {pipeline_mode = #tpu.pipeline_mode<synchronous>, transform_indices = @transform_3, window_bounds = array<i64: 16, 128>}, {pipeline_mode = #tpu.pipeline_mode<synchronous>, transform_indices = @transform_4, window_bounds = array<i64: 128, 128>}, {transform_indices = @transform_5, window_bounds = array<i64: 16, 32>}]} {
    %c0 = arith.constant 0 : index
    %c0_0 = arith.constant 0 : index
    %0 = vector.load %arg5[%c0, %c0_0] : memref<128x128xf32, #tpu.memory_space<vmem>>, vector<128x128xf32>
    %c0_1 = arith.constant 0 : index
    %c0_2 = arith.constant 0 : index
    %1 = vector.load %arg1[%c0_1, %c0_2] : memref<16x32xf32, #tpu.memory_space<vmem>>, vector<16x32xf32>
    %c0_3 = arith.constant 0 : index
    %c0_4 = arith.constant 0 : index
    %2 = vector.load %arg3[%c0_3, %c0_4] : memref<32x128xf32, #tpu.memory_space<vmem>>, vector<32x128xf32>
    %3 = arith.mulf %1, %1 : vector<16x32xf32>
    %cst = arith.constant dense<0.000000e+00> : vector<16xf32>
    %4 = vector.multi_reduction <add>, %3, %cst [1] : vector<16x32xf32> to vector<16xf32>
    %5 = vector.shape_cast %4 : vector<16xf32> to vector<16x1xf32>
    %cst_5 = arith.constant 1.000000e-10 : f32
    %6 = vector.broadcast %cst_5 : f32 to vector<16x1xf32>
    %7 = arith.maximumf %5, %6 : vector<16x1xf32>
    %8 = math.rsqrt %7 : vector<16x1xf32>
    %9 = arith.mulf %7, %8 : vector<16x1xf32>
    %cst_6 = arith.constant dense<0.000000e+00> : vector<16x128xf32>
    %10 = tpu.matmul %1, %2, %cst_6 {dimension_numbers = #tpu.dot_dimension_numbers<[1], [0], [0], [1], [0, 0, 1, 1], [], []>} : vector<16x32xf32>, vector<32x128xf32>, vector<16x128xf32> -> vector<16x128xf32>
    %11 = arith.mulf %10, %10 : vector<16x128xf32>
    %cst_7 = arith.constant dense<0.000000e+00> : vector<16x128xf32>
    %12 = tpu.matmul %11, %0, %cst_7 {dimension_numbers = #tpu.dot_dimension_numbers<[1], [0], [0], [1], [0, 0, 1, 1], [], []>} : vector<16x128xf32>, vector<128x128xf32>, vector<16x128xf32> -> vector<16x128xf32>
    %cst_8 = arith.constant 1.000000e-10 : f32
    %13 = vector.broadcast %cst_8 : f32 to vector<16x128xf32>
    %14 = arith.maximumf %12, %13 : vector<16x128xf32>
    %15 = math.rsqrt %14 : vector<16x128xf32>
    %16 = arith.mulf %14, %15 : vector<16x128xf32>
    %cst_9 = arith.constant 1.000000e+00 : f32
    %17 = vector.broadcast %cst_9 : f32 to vector<16x1xf32>
    %18 = arith.mulf %17, %9 : vector<16x1xf32>
    %cst_10 = arith.constant -0.999989986 : f32
    %cst_11 = arith.constant 0.999989986 : f32
    %19 = vector.broadcast %cst_10 : f32 to vector<16x1xf32>
    %20 = arith.maximumf %19, %18 : vector<16x1xf32>
    %21 = vector.broadcast %cst_11 : f32 to vector<16x1xf32>
    %22 = arith.minimumf %21, %20 : vector<16x1xf32>
    %cst_12 = arith.constant 1.000000e+00 : f32
    %23 = vector.broadcast %cst_12 : f32 to vector<16x1xf32>
    %24 = arith.addf %23, %22 : vector<16x1xf32>
    %cst_13 = arith.constant 1.000000e+00 : f32
    %25 = vector.broadcast %cst_13 : f32 to vector<16x1xf32>
    %26 = arith.subf %25, %22 : vector<16x1xf32>
    %27 = arith.divf %24, %26 : vector<16x1xf32>
    %28 = math.log %27 : vector<16x1xf32>
    %cst_14 = arith.constant 5.000000e-01 : f32
    %29 = vector.broadcast %cst_14 : f32 to vector<16x1xf32>
    %30 = arith.mulf %29, %28 : vector<16x1xf32>
    %31 = arith.mulf %8, %30 : vector<16x1xf32>
    %32 = vector.broadcast %31 : vector<16x1xf32> to vector<16x128xf32>
    %33 = arith.mulf %16, %32 : vector<16x128xf32>
    %cst_15 = arith.constant -1.500000e+01 : f32
    %cst_16 = arith.constant 1.500000e+01 : f32
    %34 = vector.broadcast %cst_15 : f32 to vector<16x128xf32>
    %35 = arith.maximumf %34, %33 : vector<16x128xf32>
    %36 = vector.broadcast %cst_16 : f32 to vector<16x128xf32>
    %37 = arith.minimumf %36, %35 : vector<16x128xf32>
    %38 = math.tanh %37 : vector<16x128xf32>
    %cst_17 = arith.constant 1.000000e+00 : f32
    %39 = vector.broadcast %cst_17 : f32 to vector<16x128xf32>
    %40 = arith.mulf %15, %39 : vector<16x128xf32>
    %41 = arith.mulf %38, %40 : vector<16x128xf32>
    %42 = arith.mulf %41, %41 : vector<16x128xf32>
    %43 = arith.mulf %42, %12 : vector<16x128xf32>
    %cst_18 = arith.constant 1.000000e-10 : f32
    %44 = vector.broadcast %cst_18 : f32 to vector<16x128xf32>
    %45 = arith.maximumf %43, %44 : vector<16x128xf32>
    %cst_19 = arith.constant 0.998000979 : f32
    %46 = vector.broadcast %cst_19 : f32 to vector<16x128xf32>
    %47 = arith.cmpf ogt, %45, %46 : vector<16x128xf32>
    %48 = math.rsqrt %45 : vector<16x128xf32>
    %cst_20 = arith.constant 9.990000e-01 : f32
    %49 = vector.broadcast %cst_20 : f32 to vector<16x128xf32>
    %50 = arith.mulf %49, %48 : vector<16x128xf32>
    %51 = arith.mulf %41, %50 : vector<16x128xf32>
    %52 = arith.select %47, %51, %41 : vector<16x128xi1>, vector<16x128xf32>
    %53 = arith.mulf %10, %52 : vector<16x128xf32>
    %cst_21 = arith.constant 0.998000979 : f32
    %54 = vector.broadcast %cst_21 : f32 to vector<16x128xf32>
    %55 = arith.select %47, %54, %43 : vector<16x128xi1>, vector<16x128xf32>
    %c0_22 = arith.constant 0 : index
    %c0_23 = arith.constant 0 : index
    %56 = vector.load %arg2[%c0_22, %c0_23] : memref<16x16xf32, #tpu.memory_space<vmem>>, vector<16x16xf32>
    %c0_24 = arith.constant 0 : index
    %c0_25 = arith.constant 0 : index
    %57 = vector.load %arg4[%c0_24, %c0_25] : memref<16x128xf32, #tpu.memory_space<vmem>>, vector<16x128xf32>
    %58 = arith.mulf %56, %56 : vector<16x16xf32>
    %cst_26 = arith.constant dense<0.000000e+00> : vector<16xf32>
    %59 = vector.multi_reduction <add>, %58, %cst_26 [1] : vector<16x16xf32> to vector<16xf32>
    %60 = vector.shape_cast %59 : vector<16xf32> to vector<16x1xf32>
    %cst_27 = arith.constant 1.000000e-10 : f32
    %61 = vector.broadcast %cst_27 : f32 to vector<16x1xf32>
    %62 = arith.maximumf %60, %61 : vector<16x1xf32>
    %63 = math.rsqrt %62 : vector<16x1xf32>
    %64 = arith.mulf %62, %63 : vector<16x1xf32>
    %cst_28 = arith.constant dense<0.000000e+00> : vector<16x128xf32>
    %65 = tpu.matmul %56, %57, %cst_28 {dimension_numbers = #tpu.dot_dimension_numbers<[1], [0], [0], [1], [0, 0, 1, 1], [], []>} : vector<16x16xf32>, vector<16x128xf32>, vector<16x128xf32> -> vector<16x128xf32>
    %66 = arith.mulf %65, %65 : vector<16x128xf32>
    %cst_29 = arith.constant dense<0.000000e+00> : vector<16x128xf32>
    %67 = tpu.matmul %66, %0, %cst_29 {dimension_numbers = #tpu.dot_dimension_numbers<[1], [0], [0], [1], [0, 0, 1, 1], [], []>} : vector<16x128xf32>, vector<128x128xf32>, vector<16x128xf32> -> vector<16x128xf32>
    %cst_30 = arith.constant 1.000000e-10 : f32
    %68 = vector.broadcast %cst_30 : f32 to vector<16x128xf32>
    %69 = arith.maximumf %67, %68 : vector<16x128xf32>
    %70 = math.rsqrt %69 : vector<16x128xf32>
    %71 = arith.mulf %69, %70 : vector<16x128xf32>
    %cst_31 = arith.constant 1.000000e+00 : f32
    %72 = vector.broadcast %cst_31 : f32 to vector<16x1xf32>
    %73 = arith.mulf %72, %64 : vector<16x1xf32>
    %cst_32 = arith.constant -0.999989986 : f32
    %cst_33 = arith.constant 0.999989986 : f32
    %74 = vector.broadcast %cst_32 : f32 to vector<16x1xf32>
    %75 = arith.maximumf %74, %73 : vector<16x1xf32>
    %76 = vector.broadcast %cst_33 : f32 to vector<16x1xf32>
    %77 = arith.minimumf %76, %75 : vector<16x1xf32>
    %cst_34 = arith.constant 1.000000e+00 : f32
    %78 = vector.broadcast %cst_34 : f32 to vector<16x1xf32>
    %79 = arith.addf %78, %77 : vector<16x1xf32>
    %cst_35 = arith.constant 1.000000e+00 : f32
    %80 = vector.broadcast %cst_35 : f32 to vector<16x1xf32>
    %81 = arith.subf %80, %77 : vector<16x1xf32>
    %82 = arith.divf %79, %81 : vector<16x1xf32>
    %83 = math.log %82 : vector<16x1xf32>
    %cst_36 = arith.constant 5.000000e-01 : f32
    %84 = vector.broadcast %cst_36 : f32 to vector<16x1xf32>
    %85 = arith.mulf %84, %83 : vector<16x1xf32>
    %86 = arith.mulf %63, %85 : vector<16x1xf32>
    %87 = vector.broadcast %86 : vector<16x1xf32> to vector<16x128xf32>
    %88 = arith.mulf %71, %87 : vector<16x128xf32>
    %cst_37 = arith.constant -1.500000e+01 : f32
    %cst_38 = arith.constant 1.500000e+01 : f32
    %89 = vector.broadcast %cst_37 : f32 to vector<16x128xf32>
    %90 = arith.maximumf %89, %88 : vector<16x128xf32>
    %91 = vector.broadcast %cst_38 : f32 to vector<16x128xf32>
    %92 = arith.minimumf %91, %90 : vector<16x128xf32>
    %93 = math.tanh %92 : vector<16x128xf32>
    %cst_39 = arith.constant 1.000000e+00 : f32
    %94 = vector.broadcast %cst_39 : f32 to vector<16x128xf32>
    %95 = arith.mulf %70, %94 : vector<16x128xf32>
    %96 = arith.mulf %93, %95 : vector<16x128xf32>
    %97 = arith.mulf %96, %96 : vector<16x128xf32>
    %98 = arith.mulf %97, %67 : vector<16x128xf32>
    %cst_40 = arith.constant 1.000000e-10 : f32
    %99 = vector.broadcast %cst_40 : f32 to vector<16x128xf32>
    %100 = arith.maximumf %98, %99 : vector<16x128xf32>
    %cst_41 = arith.constant 0.998000979 : f32
    %101 = vector.broadcast %cst_41 : f32 to vector<16x128xf32>
    %102 = arith.cmpf ogt, %100, %101 : vector<16x128xf32>
    %103 = math.rsqrt %100 : vector<16x128xf32>
    %cst_42 = arith.constant 9.990000e-01 : f32
    %104 = vector.broadcast %cst_42 : f32 to vector<16x128xf32>
    %105 = arith.mulf %104, %103 : vector<16x128xf32>
    %106 = arith.mulf %96, %105 : vector<16x128xf32>
    %107 = arith.select %102, %106, %96 : vector<16x128xi1>, vector<16x128xf32>
    %108 = arith.mulf %65, %107 : vector<16x128xf32>
    %cst_43 = arith.constant 0.998000979 : f32
    %109 = vector.broadcast %cst_43 : f32 to vector<16x128xf32>
    %110 = arith.select %102, %109, %98 : vector<16x128xi1>, vector<16x128xf32>
    %111 = arith.mulf %53, %108 : vector<16x128xf32>
    %cst_44 = arith.constant dense<0.000000e+00> : vector<16x128xf32>
    %112 = tpu.matmul %111, %0, %cst_44 {dimension_numbers = #tpu.dot_dimension_numbers<[1], [0], [0], [1], [0, 0, 1, 1], [], []>} : vector<16x128xf32>, vector<128x128xf32>, vector<16x128xf32> -> vector<16x128xf32>
    %cst_45 = arith.constant 2.000000e+00 : f32
    %113 = vector.broadcast %cst_45 : f32 to vector<16x128xf32>
    %114 = arith.mulf %113, %112 : vector<16x128xf32>
    %cst_46 = arith.constant 1.000000e+00 : f32
    %115 = vector.broadcast %cst_46 : f32 to vector<16x128xf32>
    %116 = arith.addf %115, %114 : vector<16x128xf32>
    %cst_47 = arith.constant 1.000000e+00 : f32
    %117 = vector.broadcast %cst_47 : f32 to vector<16x128xf32>
    %118 = arith.mulf %117, %110 : vector<16x128xf32>
    %119 = arith.addf %116, %118 : vector<16x128xf32>
    %120 = arith.mulf %119, %53 : vector<16x128xf32>
    %cst_48 = arith.constant 1.000000e+00 : f32
    %121 = vector.broadcast %cst_48 : f32 to vector<16x128xf32>
    %122 = arith.mulf %121, %55 : vector<16x128xf32>
    %cst_49 = arith.constant 1.000000e+00 : f32
    %123 = vector.broadcast %cst_49 : f32 to vector<16x128xf32>
    %124 = arith.subf %123, %122 : vector<16x128xf32>
    %125 = arith.mulf %124, %108 : vector<16x128xf32>
    %126 = arith.addf %120, %125 : vector<16x128xf32>
    %cst_50 = arith.constant 1.000000e+00 : f32
    %127 = vector.broadcast %cst_50 : f32 to vector<16x128xf32>
    %128 = arith.addf %127, %114 : vector<16x128xf32>
    %129 = arith.mulf %55, %110 : vector<16x128xf32>
    %cst_51 = arith.constant 1.000000e+00 : f32
    %130 = vector.broadcast %cst_51 : f32 to vector<16x128xf32>
    %131 = arith.mulf %130, %129 : vector<16x128xf32>
    %132 = arith.addf %128, %131 : vector<16x128xf32>
    %cst_52 = arith.constant 9.99999974E-6 : f32
    %133 = vector.broadcast %cst_52 : f32 to vector<16x128xf32>
    %134 = arith.maximumf %132, %133 : vector<16x128xf32>
    %cst_53 = arith.constant 1.000000e+00 : f32
    %135 = vector.broadcast %cst_53 : f32 to vector<16x128xf32>
    %136 = arith.divf %135, %134 : vector<16x128xf32>
    %137 = arith.mulf %126, %136 : vector<16x128xf32>
    %138 = vector.extract_strided_slice %137 {offsets = [0, 0], sizes = [16, 32], strides = [1, 1]} : vector<16x128xf32> to vector<16x32xf32>
    %c0_54 = arith.constant 0 : index
    %c0_55 = arith.constant 0 : index
    %139 = vector.load %arg6[%c0_54, %c0_55] : memref<16x32xf32, #tpu.memory_space<vmem>>, vector<16x32xf32>
    tpu.vector_store %arg6[%c0_54, %c0_55], %138 {strides = array<i32>} : memref<16x32xf32, #tpu.memory_space<vmem>>, vector<16x32xf32>,
    return
  }
  func.func @transform_0(%arg0: i32) -> (i32, i32) {
    %c0_i32 = arith.constant 0 : i32
    %c0_i32_0 = arith.constant 0 : i32
    return %arg0, %c0_i32 : i32, i32
  }
  func.func @transform_1(%arg0: i32) -> (i32, i32) {
    %c0_i32 = arith.constant 0 : i32
    %c0_i32_0 = arith.constant 0 : i32
    return %arg0, %c0_i32 : i32, i32
  }
  func.func @transform_2(%arg0: i32) -> (i32, i32) {
    %c0_i32 = arith.constant 0 : i32
    %c0_i32_0 = arith.constant 0 : i32
    %c0_i32_1 = arith.constant 0 : i32
    return %c0_i32, %c0_i32_0 : i32, i32
  }
  func.func @transform_3(%arg0: i32) -> (i32, i32) {
    %c0_i32 = arith.constant 0 : i32
    %c0_i32_0 = arith.constant 0 : i32
    %c0_i32_1 = arith.constant 0 : i32
    return %c0_i32, %c0_i32_0 : i32, i32
  }
  func.func @transform_4(%arg0: i32) -> (i32, i32) {
    %c0_i32 = arith.constant 0 : i32
    %c0_i32_0 = arith.constant 0 : i32
    %c0_i32_1 = arith.constant 0 : i32
    return %c0_i32, %c0_i32_0 : i32, i32
  }
  func.func @transform_5(%arg0: i32) -> (i32, i32) {
    %c0_i32 = arith.constant 0 : i32
    %c0_i32_0 = arith.constant 0 : i32
    return %arg0, %c0_i32 : i32, i32
  }
}

</mosaic_0001>

<bundles_post_ra>
// kernel: tpu_custom_call.1
= control target key start
LH: loop header
LB: loop body
LE: loop exit
PB: predicated region body
PF: predicated region fallthrough
CT: control target
= control target key end

     0   :  { %10 = vsyncpa [#allocation3], 0  ;;  %s1465_s0 = inlined_call_operand.hbm [shape: f32[16,32], index: 0, kind: input, shape index: {}]   ;;  %s1466_s1 = inlined_call_operand.hbm [shape: f32[16,16], index: 1, kind: input, shape index: {}]   ;;  %s1467_s2 = inlined_call_operand.hbm [shape: f32[32,128], index: 2, kind: input, shape index: {}]   ;;  %s1468_s3 = inlined_call_operand.hbm [shape: f32[16,128], index: 3, kind: input, shape index: {}]   ;;  %s1469_s4 = inlined_call_operand.hbm [shape: f32[128,128], index: 4, kind: input, shape index: {}]   ;;  %s1470_s5 = inlined_call_operand.hbm [shape: f32[16,32], index: 5, kind: output, shape index: {}]  }
   0x1   :  { %11 = vsyncpa [#allocation6], 0 }
   0x2   :  { %12 = vsyncpa [#allocation9], 0 }
   0x3   :  { %13 = vsyncpa [#allocation4], 0  ;;  %s1204_s18 = smov [#allocation5]   ;;  %s1205_s20 = smov [#allocation8]  }
   0x4   :  { %s31_s19 = sshll.u32 %s1204_s18, 4  ;;  %s55_s21 = sshll.u32 %s1205_s20, 4  ;;  %s32_s19 = int_to_ptr.vmem [resolvable:$true] %s31_s19  ;;  %s1242_s21 = int_to_ptr.vmem [resolvable:$true] %s55_s21 }
   0x5   :  { %s1064_s24 = scalar_lea.hbm %s1466_s1, 256 }
   0x6   :  { %p1065_p0 = scmp.ne.s32.totalorder %s1466_s1, %s1064_s24  ;;  %p1068_p1 = scmp.lt.u32.totalorder %s1064_s24, %s1466_s1 }
   0x8   :  { %p1070_p2 = pnand %p1068_p1, %p1065_p0 }
   0xa   :  { %1073 = shalt.err (!%p1070_p2)
}
   0xb   :  { %s1074_s29 = scalar_lea.vmem %s32_s19, 256  ;;  %p1079_p4 = scmp.lt.s32.totalorder %s32_s19, %s32_s19 }
   0xc   :  { %p1075_p3 = scmp.ne.s32.totalorder %s32_s19, %s1074_s29  ;;  %p1080_p5 = scmp.lt.s32.totalorder %s1074_s29, %s1074_s29 }
   0xe   :  { %p1081_p6 = por %p1080_p5, %p1079_p4 }
  0x10   :  { %p1082_p7 = pnand %p1081_p6, %p1075_p3 }
  0x12   :  { %1085 = shalt.err (!%p1082_p7)
}
  0x13   :  { %s1206_s30 = smov 128   ;;  %s1207_s6 = smov 8  }
  0x14   :  { %37 = dma.hbm_to_vmem [thread:$0]  %s1466_s1, 256, %s32_s19, [#allocation6], %s1206_s30, %s1206_s30, %s1207_s6  }
  0x15   :  { %s1086_s11 = scalar_lea.hbm %s1468_s3, 256 }
  0x16   :  { %p1087_p8 = scmp.ne.s32.totalorder %s1468_s3, %s1086_s11  ;;  %p1090_p9 = scmp.lt.u32.totalorder %s1086_s11, %s1468_s3 }
  0x18   :  { %p1092_p10 = pnand %p1090_p9, %p1087_p8 }
  0x1a   :  { %1095 = shalt.err (!%p1092_p10)
}
  0x1b   :  { %s1096_s16 = scalar_lea.vmem %s1242_s21, 256  ;;  %p1101_p12 = scmp.lt.s32.totalorder %s1242_s21, %s1242_s21 }
  0x1c   :  { %p1097_p11 = scmp.ne.s32.totalorder %s1242_s21, %s1096_s16  ;;  %p1102_p13 = scmp.lt.s32.totalorder %s1096_s16, %s1096_s16 }
  0x1e   :  { %p1103_p0 = por %p1102_p13, %p1101_p12 }
  0x20   :  { %p1104_p1 = pnand %p1103_p0, %p1097_p11 }
  0x22   :  { %1107 = shalt.err (!%p1104_p1)
}
  0x23   :  { %61 = dma.hbm_to_vmem [thread:$0]  %s1468_s3, 256, %s1242_s21, [#allocation9], %s1206_s30, %s1206_s30, %s1207_s6  }
  0x24   :  { %s1208_s18 = smov [#allocation2]   ;;  %s1209_s20 = smov [#allocation7]  }
  0x25   :  { %s19_s19 = sshll.u32 %s1208_s18, 4  ;;  %s43_s22 = sshll.u32 %s1209_s20, 4  ;;  %s20_s19 = int_to_ptr.vmem [resolvable:$true] %s19_s19  ;;  %s1279_s22 = int_to_ptr.vmem [resolvable:$true] %s43_s22 }
  0x26   :  { %s1108_s25 = scalar_lea.hbm %s1465_s0, 256 }
  0x27   :  { %p1109_p2 = scmp.ne.s32.totalorder %s1465_s0, %s1108_s25  ;;  %p1112_p3 = scmp.lt.u32.totalorder %s1108_s25, %s1465_s0 }
  0x29   :  { %p1114_p4 = pnand %p1112_p3, %p1109_p2 }
  0x2b   :  { %1117 = shalt.err (!%p1114_p4)
}
  0x2c   :  { %s1118_s3 = scalar_lea.vmem %s20_s19, 256  ;;  %p1123_p6 = scmp.lt.s32.totalorder %s20_s19, %s20_s19 }
  0x2d   :  { %p1119_p5 = scmp.ne.s32.totalorder %s20_s19, %s1118_s3  ;;  %p1124_p7 = scmp.lt.s32.totalorder %s1118_s3, %s1118_s3 }
  0x2f   :  { %p1125_p8 = por %p1124_p7, %p1123_p6 }
  0x31   :  { %p1126_p9 = pnand %p1125_p8, %p1119_p5 }
  0x33   :  { %1129 = shalt.err (!%p1126_p9)
}
  0x34   :  { %25 = dma.hbm_to_vmem [thread:$0]  %s1465_s0, 256, %s20_s19, [#allocation3], %s1206_s30, %s1206_s30, %s1207_s6  }
  0x35   :  { %s1130_s10 = scalar_lea.hbm %s1467_s2, 512 }
  0x36   :  { %p1131_p10 = scmp.ne.s32.totalorder %s1467_s2, %s1130_s10  ;;  %p1134_p11 = scmp.lt.u32.totalorder %s1130_s10, %s1467_s2 }
  0x38   :  { %p1136_p12 = pnand %p1134_p11, %p1131_p10 }
  0x3a   :  { %1139 = shalt.err (!%p1136_p12)
}
  0x3b   :  { %s1140_s15 = scalar_lea.vmem %s1279_s22, 512  ;;  %p1145_p0 = scmp.lt.s32.totalorder %s1279_s22, %s1279_s22 }
  0x3c   :  { %p1141_p13 = scmp.ne.s32.totalorder %s1279_s22, %s1140_s15  ;;  %p1146_p1 = scmp.lt.s32.totalorder %s1140_s15, %s1140_s15 }
  0x3e   :  { %p1147_p2 = por %p1146_p1, %p1145_p0 }
  0x40   :  { %p1148_p3 = pnand %p1147_p2, %p1141_p13 }
  0x42   :  { %1151 = shalt.err (!%p1148_p3)
}
  0x43   :  { %49 = dma.hbm_to_vmem [thread:$0]  %s1467_s2, 512, %s1279_s22, [#allocation6], %s1206_s30, %s1206_s30, %s1207_s6  }
  0x44   :  { %s1210_s1 = smov [#allocation10]   ;;  %s1152_s20 = scalar_lea.hbm %s1469_s4, 2048 }
  0x45   :  { %s67_s17 = sshll.u32 %s1210_s1, 4  ;;  %p1153_p4 = scmp.ne.s32.totalorder %s1469_s4, %s1152_s20  ;;  %s68_s17 = int_to_ptr.vmem [resolvable:$true] %s67_s17 }
  0x46   :  { %p1156_p5 = scmp.lt.u32.totalorder %s1152_s20, %s1469_s4 }
  0x48   :  { %p1158_p6 = pnand %p1156_p5, %p1153_p4 }
  0x4a   :  { %1161 = shalt.err (!%p1158_p6)
}
  0x4b   :  { %s1162_s27 = scalar_lea.vmem %s68_s17, 2048  ;;  %p1167_p8 = scmp.lt.s32.totalorder %s68_s17, %s68_s17 }
  0x4c   :  { %p1163_p7 = scmp.ne.s32.totalorder %s68_s17, %s1162_s27  ;;  %p1168_p9 = scmp.lt.s32.totalorder %s1162_s27, %s1162_s27 }
  0x4e   :  { %p1169_p10 = por %p1168_p9, %p1167_p8 }
  0x50   :  { %p1170_p11 = pnand %p1169_p10, %p1163_p7 }
  0x52   :  { %1173 = shalt.err (!%p1170_p11)
}
  0x53   :  { %73 = dma.hbm_to_vmem [thread:$0]  %s1469_s4, 2048, %s68_s17, [#allocation9], %s1206_s30, %s1206_s30, %s1207_s6  }
  0x54   :  { %1196 = dma.done.wait [#allocation3], 256  }
  0x55   :  { %1197 = vsyncadd [#allocation3], 4294967040 }
  0x56   :  { %1198 = dma.done.wait [#allocation6], 768  }
  0x57   :  { %1199 = vsyncadd [#allocation6], 4294966528 }
  0x58   :  { %1200 = dma.done.wait [#allocation9], 2304  }
  0x59   :  { %1201 = vsyncadd [#allocation9], 4294964992  ;;  %vm113_vm0 = vcmask 261120   ;;  %v107_v0 = vld [vmem:[#allocation7] sm:$0xff]  ;;  %v108_v1 = vld [vmem:[#allocation7 + $0x8] sm:$0xff]  ;;  %vm346_vm1 = vcmask 130048  }
  0x5a   :  { %v109_v2 = vld [vmem:[#allocation7 + $0x10] sm:$0xff]  ;;  %v896_v3 = vpack.c.bf16 %v108_v1, %v107_v0  ;;  %v110_v4 = vld [vmem:[#allocation7 + $0x18] sm:$0xff]  ;;  %v1331_v5 = vld [vmem:[#allocation2] sm:$0xff]  ;;  %s1211_s4 = smov [#allocation11]  }
  0x5b   :  { %v900_v6 = vpack.c.bf16 %v110_v4, %v109_v2  ;;  %781 = vmatprep.mubr.msk.f32.mxu0 %vm113_vm0, %v1331_v5  ;;  %v342_v7 = vld [vmem:[#allocation8] sm:$0xff]  ;;  %v343_v8 = vld [vmem:[#allocation8 + $0x8] sm:$0xff]  ;;  %v89_v9 = vld [vmem:[#allocation10] sm:$0xff]  ;;  %v111_v37 = vmul.f32 %v1331_v5, %v1331_v5  ;;  %s683_s28 = sshll.u32 %s1211_s4, 4  ;;  %s684_s28 = int_to_ptr.vmem [resolvable:$true] %s683_s28 }
  0x5c   :  { %897 = vmatprep.subr.bf16.mxu0 %v896_v3  ;;  %v90_v10 = vld [vmem:[#allocation10 + $0x8] sm:$0xff]  ;;  %v91_v12 = vld [vmem:[#allocation10 + $0x10] sm:$0xff]  ;;  %v92_v13 = vld [vmem:[#allocation10 + $0x18] sm:$0xff]  ;;  %v936_v14 = vpack.c.bf16 %v343_v8, %v342_v7  ;;  %s1174_s29 = scalar_lea.vmem %s684_s28, 256  ;;  %p1179_p13 = scmp.lt.s32.totalorder %s684_s28, %s684_s28 }
  0x5d   :  { %899 = vmatpush3.bf16.msra.mxu0 %v896_v3  ;;  %v1335_v11 = vpack.c.bf16 %v90_v10, %v89_v9  ;;  %v1337_v15 = vpack.c.bf16 %v92_v13, %v91_v12  ;;  %v93_v16 = vld [vmem:[#allocation10 + $0x20] sm:$0xff]  ;;  %v94_v17 = vld [vmem:[#allocation10 + $0x28] sm:$0xff]  ;;  %v106_v18 = vld [vmem:[#allocation2 + $0x8] sm:$0xff]  ;;  %v114_v39 = vsel %vm113_vm0, %v111_v37, 0.0  ;;  %p1175_p12 = scmp.ne.s32.totalorder %s684_s28, %s1174_s29  ;;  %p1180_p0 = scmp.lt.s32.totalorder %s1174_s29, %s1174_s29 }
  0x5e   :  { %901 = vmatprep.subr.bf16.mxu0 %v900_v6  ;;  %v340_v19 = vld [vmem:[#allocation5] sm:$0xff]  ;;  %v1342_v20 = vpack.c.bf16 %v94_v17, %v93_v16  ;;  %v95_v21 = vld [vmem:[#allocation10 + $0x30] sm:$0xff]  ;;  %v96_v22 = vld [vmem:[#allocation10 + $0x38] sm:$0xff]  ;;  %v112_v38 = vmul.f32 %v106_v18, %v106_v18  ;;  %115 = vadd.xlane.f32.xlu0 %v114_v39 }
  0x5f   :  { %905 = vmatprep.subr.bf16.mxu1 %v1335_v11  ;;  %v341_v23 = vld [vmem:[#allocation5 + $0x8] sm:$0xff]  ;;  %v1347_v24 = vpack.c.bf16 %v96_v22, %v95_v21  ;;  %v97_v25 = vld [vmem:[#allocation10 + $0x40] sm:$0xff]  ;;  %v99_v28 = vld [vmem:[#allocation10 + $0x50] sm:$0xff]  ;;  %v344_v41 = vmul.f32 %v340_v19, %v340_v19  ;;  %p1181_p1 = por %p1180_p0, %p1179_p13 }
  0x60   :  { %907 = vmatpush3.bf16.msra.mxu1 %v1335_v11  ;;  %v98_v26 = vld [vmem:[#allocation10 + $0x48] sm:$0xff]  ;;  %v100_v29 = vld [vmem:[#allocation10 + $0x58] sm:$0xff]  ;;  %v101_v31 = vld [vmem:[#allocation10 + $0x60] sm:$0xff]  ;;  %v117_v40 = vsel %vm113_vm0, %v112_v38, 0.0  ;;  %v345_v42 = vmul.f32 %v341_v23, %v341_v23 }
  0x61   :  { %903 = vmatpush3.bf16.msra.mxu0 %v900_v6  ;;  %909 = vmatprep.subr.bf16.mxu1 %v1337_v15  ;;  %v1355_v27 = vpack.c.bf16 %v98_v26, %v97_v25  ;;  %v924_v30 = vpack.c.bf16 %v100_v29, %v99_v28  ;;  %v102_v32 = vld [vmem:[#allocation10 + $0x68] sm:$0xff]  ;;  %v103_v34 = vld [vmem:[#allocation10 + $0x70] sm:$0xff]  ;;  %v104_v35 = vld [vmem:[#allocation10 + $0x78] sm:$0xff]  ;;  %v347_v43 = vsel %vm346_vm1, %v344_v41, 0.0  ;;  %p1182_p2 = pnand %p1181_p1, %p1175_p12 }
  0x62   :  { %937 = vmatprep.subr.bf16.mxu0 %v936_v14  ;;  %v928_v33 = vpack.c.bf16 %v102_v32, %v101_v31  ;;  %v932_v36 = vpack.c.bf16 %v104_v35, %v103_v34  ;;  %118 = vadd.xlane.f32.xlu1 %v117_v40  ;;  %v350_v44 = vsel %vm346_vm1, %v345_v42, 0.0 }
  0x63   :  { %348 = vadd.xlane.f32.xlu0 %v347_v43 }
  0x64   :  { %782 = vmatmul.mubr.msk.f32.vlgmr.msra.gmra.mrb[0].mxu0 %vm113_vm0, %v106_v18  ;;  %911 = vmatpush3.bf16.msra.mxu1 %v1337_v15 }
  0x65   :  { %939 = vmatpush3.bf16.msra.mxu0 %v936_v14  ;;  %823 = vmatprep.mubr.msk.f32.mxu0 %vm346_vm1, %v340_v19 }
  0x66   :  { %941 = vmatprep.subr.bf16.mxu0 %v1335_v11  ;;  %913 = vmatprep.subr.bf16.mxu1 %v1342_v20 }
  0x67   :  { %351 = vadd.xlane.f32.xlu1 %v350_v44 }
  0x68   :  { %824 = vmatmul.mubr.msk.f32.vlgmr.msra.gmra.mrb[2].mxu0 %vm346_vm1, %v341_v23  ;;  %915 = vmatpush3.bf16.msra.mxu1 %v1342_v20 }
  0x69   :  { %943 = vmatpush3.bf16.msra.mxu0 %v1335_v11  ;;  %917 = vmatprep.subr.bf16.mxu1 %v1347_v24 }
  0x6a   :  { %945 = vmatprep.subr.bf16.mxu0 %v1337_v15 }
  0x6c   :  { %919 = vmatpush3.bf16.msra.mxu1 %v1347_v24 }
  0x6d   :  { %947 = vmatpush3.bf16.msra.mxu0 %v1337_v15  ;;  %921 = vmatprep.subr.bf16.mxu1 %v1355_v27 }
  0x6e   :  { %949 = vmatprep.subr.bf16.mxu0 %v1342_v20 }
  0x70   :  { %923 = vmatpush3.bf16.msra.mxu1 %v1355_v27 }
  0x71   :  { %951 = vmatpush3.bf16.msra.mxu0 %v1342_v20  ;;  %925 = vmatprep.subr.bf16.mxu1 %v924_v30 }
  0x72   :  { %953 = vmatprep.subr.bf16.mxu0 %v1347_v24 }
  0x74   :  { %927 = vmatpush3.bf16.msra.mxu1 %v924_v30 }
  0x75   :  { %955 = vmatpush3.bf16.msra.mxu0 %v1347_v24  ;;  %929 = vmatprep.subr.bf16.mxu1 %v928_v33 }
  0x76   :  { %957 = vmatprep.subr.bf16.mxu0 %v1355_v27 }
  0x78   :  { %931 = vmatpush3.bf16.msra.mxu1 %v928_v33 }
  0x79   :  { %959 = vmatpush3.bf16.msra.mxu0 %v1355_v27  ;;  %933 = vmatprep.subr.bf16.mxu1 %v932_v36 }
  0x7a   :  { %961 = vmatprep.subr.bf16.mxu0 %v924_v30 }
  0x7c   :  { %935 = vmatpush3.bf16.msra.mxu1 %v932_v36 }
  0x7d   :  { %963 = vmatpush3.bf16.msra.mxu0 %v924_v30  ;;  %973 = vmatprep.subr.bf16.mxu1 %v1335_v11 }
  0x7e   :  { %965 = vmatprep.subr.bf16.mxu0 %v928_v33 }
  0x81   :  { %967 = vmatpush3.bf16.msra.mxu0 %v928_v33 }
  0x82   :  { %969 = vmatprep.subr.bf16.mxu0 %v932_v36 }
  0x85   :  { %971 = vmatpush3.bf16.msra.mxu0 %v932_v36 }
  0xeb   :  { %v116_v54 = vpop.xlane.xlu0 %115 }
  0xec   :  { %v120_v56 = vmax.f32 %v116_v54, 1e-10 }
  0xef   :  { %v119_v53 = vpop.xlane.xlu1 %118 }
  0xf0   :  { %v121_v55 = vmax.f32 %v119_v53, 1e-10  ;;  %v349_v58 = vpop.xlane.xlu0 %348 }
  0xf1   :  { %v353_v60 = vmax.f32 %v349_v58, 1e-10 }
  0xf2   :  { %1012 = vrsqrt.f32 %v121_v55 }
  0xf3   :  { %1014 = vrsqrt.f32 %v120_v56 }
  0xf4   :  { %v352_v57 = vpop.xlane.xlu1 %351 }
  0xf5   :  { %v354_v59 = vmax.f32 %v352_v57, 1e-10 }
  0xf7   :  { %1016 = vrsqrt.f32 %v354_v59 }
  0xf8   :  { %1018 = vrsqrt.f32 %v353_v60 }
  0xfc   :  { %v1013_v61 = vpop.eup %1012 }
  0xfd   :  { %v1400_v62 = vpop.eup %1014  ;;  %v125_v63 = vmul.f32 %v1013_v61, %v121_v55 }
  0xfe   :  { %v124_v1 = vmul.f32 %v1400_v62, %v120_v56 }
  0xff   :  { %v700_v3 = vclamps-f32 %v125_v63, 0.99999 }
 0x100   :  { %v699_v5 = vclamps-f32 %v124_v1, 0.99999 }
 0x101   :  { %v1402_v0 = vpop.eup %1016  ;;  %v297_v7 = vsub.f32 1.0, %v700_v3  ;;  %v295_v13 = vadd.f32 1.0, %v700_v3 }
 0x102   :  { %v1405_v2 = vpop.eup %1018  ;;  %v358_v4 = vmul.f32 %v1402_v0, %v354_v59  ;;  %v296_v9 = vsub.f32 1.0, %v699_v5 }
 0x103   :  { %v357_v6 = vmul.f32 %v1405_v2, %v353_v60  ;;  %1020 = vrcp.f32 %v297_v7 }
 0x104   :  { %v706_v8 = vclamps-f32 %v358_v4, 0.99999  ;;  %1022 = vrcp.f32 %v296_v9 }
 0x105   :  { %v705_v10 = vclamps-f32 %v357_v6, 0.99999 }
 0x106   :  { %v528_v18 = vadd.f32 1.0, %v706_v8 }
 0x107   :  { %v529_v12 = vsub.f32 1.0, %v705_v10  ;;  %v527_v21 = vadd.f32 1.0, %v705_v10 }
 0x10d   :  { %v1021_v14 = vpop.eup %1020 }
 0x10e   :  { %v1023_v16 = vpop.eup %1022  ;;  %v301_v17 = vmul.f32 %v1021_v14, %v295_v13 }
 0x137   :  { %v1375_v45 = vpop.f32.mrb[0].mxu0 }
 0x138   :  { %v1377_v46 = vpop.f32.mrb[1].mxu0  ;;  %v208_v48 = vmul.f32 %v1375_v45, %v1375_v45 }
 0x139   :  { %v207_v47 = vmul.f32 %v1377_v46, %v1377_v46 }
 0x13b   :  { %816 = vmatprep.mubr.f32.mxu1 %v207_v47  ;;  %v1383_v49 = vpop.f32.mrb[2].mxu0 }
 0x13c   :  { %817 = vmatmul.mubr.f32.vlgmr.msra.gmra.mrb[0].mxu1 %v208_v48  ;;  %v1385_v50 = vpop.f32.mrb[3].mxu0  ;;  %v441_v52 = vmul.f32 %v1383_v49, %v1383_v49 }
 0x13d   :  { %v440_v51 = vmul.f32 %v1385_v50, %v1385_v50  ;;  %975 = vmatpush3.bf16.msra.mxu1 %v1335_v11  ;;  %v530_v11 = vsub.f32 1.0, %v706_v8 }
 0x13e   :  { %977 = vmatprep.subr.bf16.mxu1 %v1337_v15 }
 0x13f   :  { %858 = vmatprep.mubr.f32.mxu0 %v440_v51  ;;  %1024 = vrcp.f32 %v530_v11 }
 0x140   :  { %859 = vmatmul.mubr.f32.vlgmr.msra.gmra.mrb[4].mxu0 %v441_v52  ;;  %1026 = vrcp.f32 %v529_v12 }
 0x141   :  { %979 = vmatpush3.bf16.msra.mxu1 %v1337_v15  ;;  %v294_v15 = vadd.f32 1.0, %v699_v5  ;;  %1028 = vlog2.f32 %v301_v17 }
 0x142   :  { %981 = vmatprep.subr.bf16.mxu1 %v1342_v20 }
 0x145   :  { %983 = vmatpush3.bf16.msra.mxu1 %v1342_v20  ;;  %v299_v20 = vmul.f32 %v1023_v16, %v294_v15 }
 0x146   :  { %985 = vmatprep.subr.bf16.mxu1 %v1347_v24 }
 0x147   :  { %1030 = vlog2.f32 %v299_v20 }
 0x149   :  { %987 = vmatpush3.bf16.msra.mxu1 %v1347_v24  ;;  %v1025_v19 = vpop.eup %1024 }
 0x14a   :  { %989 = vmatprep.subr.bf16.mxu1 %v1355_v27  ;;  %v1027_v22 = vpop.eup %1026  ;;  %v534_v23 = vmul.f32 %v1025_v19, %v528_v18 }
 0x14b   :  { %v532_v24 = vmul.f32 %v1027_v22, %v527_v21  ;;  %v1029_v29 = vpop.eup %1028 }
 0x14c   :  { %1032 = vlog2.f32 %v534_v23  ;;  %v305_v34 = vmul.f32 0.6931472, %v1029_v29 }
 0x14d   :  { %991 = vmatpush3.bf16.msra.mxu1 %v1355_v27  ;;  %1034 = vlog2.f32 %v532_v24 }
 0x14e   :  { %993 = vmatprep.subr.bf16.mxu1 %v924_v30  ;;  %v307_v40 = vmul.f32 0.5, %v305_v34 }
 0x150   :  { %v309_v48 = vmul.f32 %v1013_v61, %v307_v40 }
 0x151   :  { %995 = vmatpush3.bf16.msra.mxu1 %v924_v30  ;;  %v1031_v30 = vpop.eup %1030 }
 0x152   :  { %997 = vmatprep.subr.bf16.mxu1 %v928_v33  ;;  %v303_v37 = vmul.f32 0.6931472, %v1031_v30 }
 0x154   :  { %v306_v41 = vmul.f32 0.5, %v303_v37 }
 0x155   :  { %999 = vmatpush3.bf16.msra.mxu1 %v928_v33 }
 0x156   :  { %1001 = vmatprep.subr.bf16.mxu1 %v932_v36  ;;  %v308_v53 = vmul.f32 %v1400_v62, %v306_v41 }
 0x159   :  { %1003 = vmatpush3.bf16.msra.mxu1 %v932_v36  ;;  %v1033_v36 = vpop.eup %1032 }
 0x15a   :  { %v1035_v38 = vpop.eup %1034  ;;  %v538_v39 = vmul.f32 0.6931472, %v1033_v36 }
 0x15b   :  { %v536_v42 = vmul.f32 0.6931472, %v1035_v38 }
 0x15c   :  { %v540_v51 = vmul.f32 0.5, %v538_v39 }
 0x15d   :  { %v539_v54 = vmul.f32 0.5, %v536_v42 }
 0x15e   :  { %v542_v63 = vmul.f32 %v1402_v0, %v540_v51 }
 0x15f   :  { %v541_v4 = vmul.f32 %v1405_v2, %v539_v54 }
 0x20f   :  { %v818_v25 = vpop.f32.mrb[0].mxu1 }
 0x210   :  { %v285_v26 = vmax.f32 %v818_v25, 1e-10  ;;  %v275_v27 = vpop.f32.mrb[1].mxu1 }
 0x211   :  { %v284_v28 = vmax.f32 %v275_v27, 1e-10 }
 0x212   :  { %1036 = vrsqrt.f32 %v285_v26 }
 0x213   :  { %1038 = vrsqrt.f32 %v284_v28  ;;  %v860_v31 = vpop.f32.mrb[4].mxu0 }
 0x214   :  { %v518_v32 = vmax.f32 %v860_v31, 1e-10  ;;  %v508_v33 = vpop.f32.mrb[5].mxu0 }
 0x215   :  { %v517_v35 = vmax.f32 %v508_v33, 1e-10 }
 0x216   :  { %1040 = vrsqrt.f32 %v518_v32 }
 0x217   :  { %1042 = vrsqrt.f32 %v517_v35 }
 0x21c   :  { %v1037_v43 = vpop.eup %1036 }
 0x21d   :  { %v1039_v44 = vpop.eup %1038  ;;  %v289_v47 = vmul.f32 %v1037_v43, %v285_v26 }
 0x21e   :  { %v288_v52 = vmul.f32 %v1039_v44, %v284_v28 }
 0x21f   :  { %v311_v55 = vmul.f32 %v309_v48, %v289_v47 }
 0x220   :  { %v1041_v56 = vpop.eup %1040  ;;  %v310_v57 = vmul.f32 %v308_v53, %v288_v52 }
 0x221   :  { %v1043_v58 = vpop.eup %1042  ;;  %v702_v59 = vclamps-f32 %v311_v55, 15.0  ;;  %v522_v60 = vmul.f32 %v1041_v56, %v518_v32 }
 0x222   :  { %v701_v1 = vclamps-f32 %v310_v57, 15.0  ;;  %v521_v3 = vmul.f32 %v1043_v58, %v517_v35 }
 0x223   :  { %1044 = vtanh.f32 %v702_v59  ;;  %v544_v5 = vmul.f32 %v542_v63, %v522_v60 }
 0x224   :  { %1046 = vtanh.f32 %v701_v1  ;;  %v543_v61 = vmul.f32 %v541_v4, %v521_v3 }
 0x225   :  { %v708_v6 = vclamps-f32 %v544_v5, 15.0 }
 0x226   :  { %v707_v7 = vclamps-f32 %v543_v61, 15.0 }
 0x227   :  { %1048 = vtanh.f32 %v708_v6 }
 0x228   :  { %1050 = vtanh.f32 %v707_v7 }
 0x22d   :  { %v1045_v62 = vpop.eup %1044 }
 0x22e   :  { %v1047_v8 = vpop.eup %1046  ;;  %v319_v9 = vmul.f32 %v1045_v62, %v1037_v43 }
 0x22f   :  { %v318_v10 = vmul.f32 %v1047_v8, %v1039_v44 }
 0x230   :  { %v321_v11 = vmul.f32 %v319_v9, %v319_v9 }
 0x231   :  { %v1049_v12 = vpop.eup %1048  ;;  %v320_v13 = vmul.f32 %v318_v10, %v318_v10 }
 0x232   :  { %v1051_v0 = vpop.eup %1050  ;;  %v323_v14 = vmul.f32 %v818_v25, %v321_v11  ;;  %v552_v15 = vmul.f32 %v1049_v12, %v1041_v56 }
 0x233   :  { %v322_v16 = vmul.f32 %v320_v13, %v275_v27  ;;  %v551_v2 = vmul.f32 %v1051_v0, %v1043_v58 }
 0x234   :  { %v325_v17 = vmax.f32 %v323_v14, 1e-10  ;;  %v554_v18 = vmul.f32 %v552_v15, %v552_v15 }
 0x235   :  { %v324_v19 = vmax.f32 %v322_v16, 1e-10  ;;  %v553_v20 = vmul.f32 %v551_v2, %v551_v2 }
 0x236   :  { %vm1412_vm2 = vcmp.gt.f32.partialorder %v325_v17, 0.998001  ;;  %1052 = vrsqrt.f32 %v325_v17  ;;  %v556_v22 = vmul.f32 %v860_v31, %v554_v18 }
 0x237   :  { %v339_v23 = vsel %vm1412_vm2, 0.998001, %v323_v14  ;;  %vm1418_vm3 = vcmp.gt.f32.partialorder %v324_v19, 0.998001  ;;  %1054 = vrsqrt.f32 %v324_v19  ;;  %v555_v25 = vmul.f32 %v553_v20, %v508_v33 }
 0x238   :  { %v338_v26 = vsel %vm1418_vm3, 0.998001, %v322_v16  ;;  %v558_v27 = vmax.f32 %v556_v22, 1e-10  ;;  %v659_v56 = vsub.f32 1.0, %v339_v23 }
 0x239   :  { %v557_v28 = vmax.f32 %v555_v25, 1e-10  ;;  %v658_v59 = vsub.f32 1.0, %v338_v26 }
 0x23a   :  { %vm1424_vm4 = vcmp.gt.f32.partialorder %v558_v27, 0.998001  ;;  %1056 = vrsqrt.f32 %v558_v27 }
 0x23b   :  { %v572_v30 = vsel %vm1424_vm4, 0.998001, %v556_v22  ;;  %vm1430_vm5 = vcmp.gt.f32.partialorder %v557_v28, 0.998001  ;;  %1058 = vrsqrt.f32 %v557_v28 }
 0x23c   :  { %v665_v32 = vmul.f32 %v572_v30, %v339_v23  ;;  %v571_v33 = vsel %vm1430_vm5, 0.998001, %v555_v25 }
 0x23d   :  { %v664_v34 = vmul.f32 %v571_v33, %v338_v26 }
 0x240   :  { %v1053_v35 = vpop.eup %1052 }
 0x241   :  { %v1055_v36 = vpop.eup %1054  ;;  %v331_v37 = vmul.f32 0.999, %v1053_v35 }
 0x242   :  { %v330_v38 = vmul.f32 0.999, %v1055_v36 }
 0x243   :  { %v333_v39 = vmul.f32 %v331_v37, %v319_v9 }
 0x244   :  { %v1057_v40 = vpop.eup %1056  ;;  %v332_v41 = vmul.f32 %v330_v38, %v318_v10 }
 0x245   :  { %v1059_v42 = vpop.eup %1058  ;;  %v335_v43 = vsel %vm1412_vm2, %v333_v39, %v319_v9  ;;  %v564_v44 = vmul.f32 0.999, %v1057_v40 }
 0x246   :  { %v337_v47 = vmul.f32 %v1375_v45, %v335_v43  ;;  %v563_v48 = vmul.f32 0.999, %v1059_v42  ;;  %v334_v51 = vsel %vm1418_vm3, %v332_v41, %v318_v10 }
 0x247   :  { %v566_v52 = vmul.f32 %v564_v44, %v552_v15  ;;  %v336_v53 = vmul.f32 %v334_v51, %v1377_v46 }
 0x248   :  { %v565_v54 = vmul.f32 %v563_v48, %v551_v2 }
 0x249   :  { %v568_v55 = vsel %vm1424_vm4, %v566_v52, %v552_v15 }
 0x24a   :  { %v570_v57 = vmul.f32 %v1383_v49, %v568_v55  ;;  %v567_v58 = vsel %vm1430_vm5, %v565_v54, %v551_v2 }
 0x24b   :  { %v569_v45 = vmul.f32 %v567_v58, %v1385_v50 }
 0x24c   :  { %v661_v60 = vmul.f32 %v659_v56, %v570_v57  ;;  %v574_v3 = vmul.f32 %v570_v57, %v337_v47 }
 0x24d   :  { %v573_v63 = vmul.f32 %v569_v45, %v336_v53  ;;  %v660_v1 = vmul.f32 %v658_v59, %v569_v45 }
 0x24f   :  { %893 = vmatprep.mubr.f32.mxu1 %v573_v63 }
 0x250   :  { %894 = vmatmul.mubr.f32.vlgmr.msra.gmra.mrb[2].mxu1 %v574_v3 }
 0x323   :  { %v895_v46 = vpop.f32.mrb[2].mxu1 }
 0x324   :  { %v651_v4 = vmul.f32 2.0, %v895_v46  ;;  %v641_v5 = vpop.f32.mrb[3].mxu1 }
 0x325   :  { %v650_v61 = vmul.f32 2.0, %v641_v5 }
 0x326   :  { %v653_v6 = vadd.f32 1.0, %v651_v4 }
 0x327   :  { %v652_v7 = vadd.f32 1.0, %v650_v61 }
 0x328   :  { %v655_v62 = vadd.f32 %v653_v6, %v572_v30  ;;  %v667_v49 = vadd.f32 %v665_v32, %v653_v6 }
 0x329   :  { %v654_v8 = vadd.f32 %v652_v7, %v571_v33  ;;  %v666_v9 = vadd.f32 %v664_v34, %v652_v7 }
 0x32a   :  { %v657_v10 = vmul.f32 %v655_v62, %v337_v47  ;;  %v669_v11 = vmax.f32 %v667_v49, 1e-05 }
 0x32b   :  { %v656_v12 = vmul.f32 %v654_v8, %v336_v53  ;;  %v668_v50 = vmax.f32 %v666_v9, 1e-05 }
 0x32c   :  { %v663_v13 = vadd.f32 %v661_v60, %v657_v10  ;;  %1060 = vrcp.f32 %v669_v11 }
 0x32d   :  { %v662_v0 = vadd.f32 %v660_v1, %v656_v12  ;;  %1062 = vrcp.f32 %v668_v50 }
 0x336   :  { %v1061_v14 = vpop.eup %1060 }
 0x337   :  { %v1063_v15 = vpop.eup %1062  ;;  %v675_v16 = vmul.f32 %v1061_v14, %v663_v13 }
 0x338   :  { %v674_v2 = vmul.f32 %v1063_v15, %v662_v0 }
 0x339   :  { %677 = vst.msk [vmem:[#allocation11 + $0x8] sm:$0xff] %vm113_vm0, %v675_v16 }
 0x33a   :  { %676 = vst.msk [vmem:[#allocation11] sm:$0xff] %vm113_vm0, %v674_v2 }
 0x33b   :  { %1185 = shalt.err (!%p1182_p2)
}
 0x33c   :  { %s1186_s7 = scalar_lea.hbm %s1470_s5, 256 }
 0x33d   :  { %p1187_p3 = scmp.ne.s32.totalorder %s1470_s5, %s1186_s7  ;;  %p1190_p4 = scmp.lt.u32.totalorder %s1186_s7, %s1470_s5 }
 0x33f   :  { %p1192_p5 = pnand %p1190_p4, %p1187_p3 }
 0x341   :  { %1195 = shalt.err (!%p1192_p5)
}
 0x342   :  { %689 = dma.vmem_to_hbm [thread:$0]  %s684_s28, 256, %s1470_s5, [#allocation4], %s1206_s30, %s1206_s30, %s1207_s6  }
 0x343   :  { %1202 = dma.done.wait [#allocation4], 256  }
 0x344   :  { %1203 = vsyncadd [#allocation4], 4294967040 }
 0x345   :  { %693 = vsyncpa [#allocation3], 1 }
 0x346   :  { %694 = vsyncpa [#allocation6], 1 }
 0x347   :  { %695 = vsyncpa [#allocation9], 1 }
 0x348   :  { %696 = vsyncpa [#allocation4], 1 }

</bundles_post_ra>
